<compile_context>
chip_gen: v7x
topology: tpu7x:2x2x1
jax: 0.10.0
libtpu: 0.0.40
codegen_flags: <defaults>
</compile_context>

<pallas_src>
import functools

import jax
import jax.numpy as jnp
from jax.experimental import pallas as pl
from jax.experimental.pallas import tpu as pltpu  # noqa: F401  (TPU backend)


def _rnn_kernel(T, B, x_ref, wih0_ref, whh0_ref, b0_ref,
                w1_ref, b1_ref, wfc_ref, bfc_ref, out_ref):
    """Whole 2-layer tanh RNN (T steps) + FC head in one invocation.

    x_ref   : (T*B, D)  time-major (row = t*B + b), batch padded to mult of 8
    wih0_ref: (D, H)    W_ih0^T
    whh0_ref: (H, H)    W_hh0^T
    b0_ref  : (1, H)    b_ih0 + b_hh0
    w1_ref  : (2H, H)   [W_ih1^T ; W_hh1^T]   (fused layer-1 weights)
    b1_ref  : (1, H)    b_ih1 + b_hh1
    wfc_ref : (H, Cp)   W_fc^T zero-padded to Cp=128k lanes
    bfc_ref : (1, Cp)   b_fc zero-padded
    out_ref : (B, Cp)
    """
    H = whh0_ref.shape[0]

    # Hoisted, time-invariant layer-0 input projection: one big MXU call.
    xproj = (jnp.dot(x_ref[...], wih0_ref[...],
                     preferred_element_type=jnp.float32)
             + b0_ref[...])                                   # (T*B, H)

    # Hoist loop-invariant weight loads / bias broadcast out of the recurrence.
    whh0 = whh0_ref[...]
    w1 = w1_ref[...]
    b1 = jnp.broadcast_to(b1_ref[...], (B, H))

    h0 = jnp.zeros((B, H), jnp.float32)
    h1 = jnp.zeros((B, H), jnp.float32)

    # Fully-unrolled serial recurrence (T small & static): per step only the
    # (B,H)x(H,H) recurrent matmul, the fused (B,2H)x(2H,H) matmul and 2 tanh.
    for t in range(T):
        xp_t = xproj[t * B:(t + 1) * B, :]                    # (B, H), tile-aligned
        h0 = jnp.tanh(xp_t + jnp.dot(h0, whh0,
                                     preferred_element_type=jnp.float32))
        h01 = jnp.concatenate([h0, h1], axis=1)               # (B, 2H)
        h1 = jnp.tanh(jnp.dot(h01, w1,
                              preferred_element_type=jnp.float32) + b1)

    # FC head on the last step's top-layer hidden state (lane-dense store).
    logits = (jnp.dot(h1, wfc_ref[...], preferred_element_type=jnp.float32)
              + bfc_ref[...])
    out_ref[...] = logits.astype(out_ref.dtype)


@jax.jit
def rnn_model_forward(x, params):
    """x: (B, T, D) float32.  Returns (B, num_classes) float32."""
    B, T, D = x.shape
    H = params["w_hh0"].shape[0]
    C = params["w_fc"].shape[0]

    B_pad = max(8, ((B + 7) // 8) * 8)            # sublane multiple
    C_pad = max(128, ((C + 127) // 128) * 128)    # lane multiple -> unmasked vst

    # Time-major, batch-padded, flattened input: row index = t * B_pad + b.
    x_tm = jnp.transpose(x, (1, 0, 2))                       # (T, B, D)
    x_tm = jnp.pad(x_tm, ((0, 0), (0, B_pad - B), (0, 0)))   # (T, B_pad, D)
    x_flat = x_tm.reshape(T * B_pad, D)

    # Transposed weights (in_features, out_features); fold bias pairs; fuse
    # layer-1 weights; zero-pad FC head to 128 output lanes.
    wih0_t = params["w_ih0"].T                                # (D, H)
    whh0_t = params["w_hh0"].T                                # (H, H)
    b0 = (params["b_ih0"] + params["b_hh0"]).reshape(1, H)
    w1_t = jnp.concatenate([params["w_ih1"].T,
                            params["w_hh1"].T], axis=0)       # (2H, H)
    b1 = (params["b_ih1"] + params["b_hh1"]).reshape(1, H)
    wfc_t = jnp.zeros((H, C_pad), jnp.float32).at[:, :C].set(params["w_fc"].T)
    bfc = jnp.zeros((1, C_pad), jnp.float32).at[:, :C].set(params["b_fc"])

    # Single invocation, no grid: every operand fits comfortably in VMEM
    # (~0.5 MB total), so whole-array blocks are used by default.
    out_pad = pl.pallas_call(
        functools.partial(_rnn_kernel, T, B_pad),
        out_shape=jax.ShapeDtypeStruct((B_pad, C_pad), jnp.float32),
    )(x_flat, wih0_t, whh0_t, b0, w1_t, b1, wfc_t, bfc)

    # TODO(synk): if batch grows (>=16) on v7x, add a "parallel" batch-tile
    # grid axis so both TensorCores carry independent batch shards.
    return out_pad[:B, :C]


def _reference_forward(x, params):
    """Pure-JAX reference matching torch.nn.RNN(tanh, 2 layers) + Linear."""
    B, T, D = x.shape
    H = params["w_hh0"].shape[0]
    h0 = jnp.zeros((B, H), jnp.float32)
    h1 = jnp.zeros((B, H), jnp.float32)
    for t in range(T):
        xt = x[:, t, :]
        h0 = jnp.tanh(xt @ params["w_ih0"].T + params["b_ih0"]
                      + h0 @ params["w_hh0"].T + params["b_hh0"])
        h1 = jnp.tanh(h0 @ params["w_ih1"].T + params["b_ih1"]
                      + h1 @ params["w_hh1"].T + params["b_hh1"])
    return h1 @ params["w_fc"].T + params["b_fc"]


def init_params(key, input_size, hidden_size, num_classes):
    """Deterministic init mimicking PyTorch's U(-1/sqrt(H), 1/sqrt(H))."""
    ks = jax.random.split(key, 10)
    bound = 1.0 / jnp.sqrt(hidden_size)
    u = lambda k, shape: jax.random.uniform(k, shape, jnp.float32, -bound, bound)
    return {
        "w_ih0": u(ks[0], (hidden_size, input_size)),
        "w_hh0": u(ks[1], (hidden_size, hidden_size)),
        "b_ih0": u(ks[2], (hidden_size,)),
        "b_hh0": u(ks[3], (hidden_size,)),
        "w_ih1": u(ks[4], (hidden_size, hidden_size)),
        "w_hh1": u(ks[5], (hidden_size, hidden_size)),
        "b_ih1": u(ks[6], (hidden_size,)),
        "b_hh1": u(ks[7], (hidden_size,)),
        "w_fc":  u(ks[8], (num_classes, hidden_size)),
        "b_fc":  u(ks[9], (num_classes,)),
    }


if __name__ == "__main__":
    hidden_size = 128
    input_size = 2 * 136   # 272
    num_classes = 2
    batch = 2
    seq = 8

    key = jax.random.PRNGKey(0)
    kx, kp = jax.random.split(key)
    x = jax.random.normal(kx, (batch, seq, input_size), jnp.float32)
    params = init_params(kp, input_size, hidden_size, num_classes)

    out = rnn_model_forward(x, params)
    out = jax.block_until_ready(out)

    ref = _reference_forward(x, params)
    assert out.shape == (batch, num_classes)
    assert jnp.allclose(out, ref, atol=1e-4, rtol=1e-4), (out, ref)

    print("KERNEL_OK")
</pallas_src>

<mosaic_0001>
module attributes {stable_mosaic.version = 11 : i64} {
  func.func @_rnn_kernel(%arg0: memref<64x272xf32, #tpu.memory_space<vmem>>, %arg1: memref<272x128xf32, #tpu.memory_space<vmem>>, %arg2: memref<128x128xf32, #tpu.memory_space<vmem>>, %arg3: memref<1x128xf32, #tpu.memory_space<vmem>>, %arg4: memref<256x128xf32, #tpu.memory_space<vmem>>, %arg5: memref<1x128xf32, #tpu.memory_space<vmem>>, %arg6: memref<128x128xf32, #tpu.memory_space<vmem>>, %arg7: memref<1x128xf32, #tpu.memory_space<vmem>>, %arg8: memref<8x128xf32, #tpu.memory_space<vmem>>) attributes {dimension_semantics = [], scalar_prefetch = 0 : i64, scratch_operands = 0 : i64, tpu.core_type = #tpu.core_type<tc>} {
    %c0 = arith.constant 0 : index
    %c0_0 = arith.constant 0 : index
    %0 = vector.load %arg0[%c0, %c0_0] : memref<64x272xf32, #tpu.memory_space<vmem>>, vector<64x272xf32>
    %c0_1 = arith.constant 0 : index
    %c0_2 = arith.constant 0 : index
    %1 = vector.load %arg1[%c0_1, %c0_2] : memref<272x128xf32, #tpu.memory_space<vmem>>, vector<272x128xf32>
    %cst = arith.constant dense<0.000000e+00> : vector<64x128xf32>
    %2 = tpu.matmul %0, %1, %cst {dimension_numbers = #tpu.dot_dimension_numbers<[1], [0], [0], [1], [0, 0, 1, 1], [], []>} : vector<64x272xf32>, vector<272x128xf32>, vector<64x128xf32> -> vector<64x128xf32>
    %c0_3 = arith.constant 0 : index
    %c0_4 = arith.constant 0 : index
    %3 = vector.load %arg3[%c0_3, %c0_4] : memref<1x128xf32, #tpu.memory_space<vmem>>, vector<1x128xf32>
    %4 = vector.broadcast %3 : vector<1x128xf32> to vector<64x128xf32>
    %5 = arith.addf %2, %4 : vector<64x128xf32>
    %c0_5 = arith.constant 0 : index
    %c0_6 = arith.constant 0 : index
    %6 = vector.load %arg2[%c0_5, %c0_6] : memref<128x128xf32, #tpu.memory_space<vmem>>, vector<128x128xf32>
    %c0_7 = arith.constant 0 : index
    %c0_8 = arith.constant 0 : index
    %7 = vector.load %arg4[%c0_7, %c0_8] : memref<256x128xf32, #tpu.memory_space<vmem>>, vector<256x128xf32>
    %c0_9 = arith.constant 0 : index
    %c0_10 = arith.constant 0 : index
    %8 = vector.load %arg5[%c0_9, %c0_10] : memref<1x128xf32, #tpu.memory_space<vmem>>, vector<1x128xf32>
    %9 = vector.shape_cast %8 : vector<1x128xf32> to vector<1x128xf32>
    %10 = vector.broadcast %9 : vector<1x128xf32> to vector<8x128xf32>
    %cst_11 = arith.constant 0.000000e+00 : f32
    %11 = vector.broadcast %cst_11 : f32 to vector<8x128xf32>
    %cst_12 = arith.constant 0.000000e+00 : f32
    %12 = vector.broadcast %cst_12 : f32 to vector<8x128xf32>
    %13 = vector.extract_strided_slice %5 {offsets = [0, 0], sizes = [8, 128], strides = [1, 1]} : vector<64x128xf32> to vector<8x128xf32>
    %cst_13 = arith.constant dense<0.000000e+00> : vector<8x128xf32>
    %14 = tpu.matmul %11, %6, %cst_13 {dimension_numbers = #tpu.dot_dimension_numbers<[1], [0], [0], [1], [0, 0, 1, 1], [], []>} : vector<8x128xf32>, vector<128x128xf32>, vector<8x128xf32> -> vector<8x128xf32>
    %15 = arith.addf %13, %14 : vector<8x128xf32>
    %16 = math.tanh %15 : vector<8x128xf32>
    %17 = tpu.concatenate %16, %12 in 1 : vector<8x128xf32>, vector<8x128xf32> -> vector<8x256xf32>
    %cst_14 = arith.constant dense<0.000000e+00> : vector<8x128xf32>
    %18 = tpu.matmul %17, %7, %cst_14 {dimension_numbers = #tpu.dot_dimension_numbers<[1], [0], [0], [1], [0, 0, 1, 1], [], []>} : vector<8x256xf32>, vector<256x128xf32>, vector<8x128xf32> -> vector<8x128xf32>
    %19 = arith.addf %18, %10 : vector<8x128xf32>
    %20 = math.tanh %19 : vector<8x128xf32>
    %21 = vector.extract_strided_slice %5 {offsets = [8, 0], sizes = [8, 128], strides = [1, 1]} : vector<64x128xf32> to vector<8x128xf32>
    %cst_15 = arith.constant dense<0.000000e+00> : vector<8x128xf32>
    %22 = tpu.matmul %16, %6, %cst_15 {dimension_numbers = #tpu.dot_dimension_numbers<[1], [0], [0], [1], [0, 0, 1, 1], [], []>} : vector<8x128xf32>, vector<128x128xf32>, vector<8x128xf32> -> vector<8x128xf32>
    %23 = arith.addf %21, %22 : vector<8x128xf32>
    %24 = math.tanh %23 : vector<8x128xf32>
    %25 = tpu.concatenate %24, %20 in 1 : vector<8x128xf32>, vector<8x128xf32> -> vector<8x256xf32>
    %cst_16 = arith.constant dense<0.000000e+00> : vector<8x128xf32>
    %26 = tpu.matmul %25, %7, %cst_16 {dimension_numbers = #tpu.dot_dimension_numbers<[1], [0], [0], [1], [0, 0, 1, 1], [], []>} : vector<8x256xf32>, vector<256x128xf32>, vector<8x128xf32> -> vector<8x128xf32>
    %27 = arith.addf %26, %10 : vector<8x128xf32>
    %28 = math.tanh %27 : vector<8x128xf32>
    %29 = vector.extract_strided_slice %5 {offsets = [16, 0], sizes = [8, 128], strides = [1, 1]} : vector<64x128xf32> to vector<8x128xf32>
    %cst_17 = arith.constant dense<0.000000e+00> : vector<8x128xf32>
    %30 = tpu.matmul %24, %6, %cst_17 {dimension_numbers = #tpu.dot_dimension_numbers<[1], [0], [0], [1], [0, 0, 1, 1], [], []>} : vector<8x128xf32>, vector<128x128xf32>, vector<8x128xf32> -> vector<8x128xf32>
    %31 = arith.addf %29, %30 : vector<8x128xf32>
    %32 = math.tanh %31 : vector<8x128xf32>
    %33 = tpu.concatenate %32, %28 in 1 : vector<8x128xf32>, vector<8x128xf32> -> vector<8x256xf32>
    %cst_18 = arith.constant dense<0.000000e+00> : vector<8x128xf32>
    %34 = tpu.matmul %33, %7, %cst_18 {dimension_numbers = #tpu.dot_dimension_numbers<[1], [0], [0], [1], [0, 0, 1, 1], [], []>} : vector<8x256xf32>, vector<256x128xf32>, vector<8x128xf32> -> vector<8x128xf32>
    %35 = arith.addf %34, %10 : vector<8x128xf32>
    %36 = math.tanh %35 : vector<8x128xf32>
    %37 = vector.extract_strided_slice %5 {offsets = [24, 0], sizes = [8, 128], strides = [1, 1]} : vector<64x128xf32> to vector<8x128xf32>
    %cst_19 = arith.constant dense<0.000000e+00> : vector<8x128xf32>
    %38 = tpu.matmul %32, %6, %cst_19 {dimension_numbers = #tpu.dot_dimension_numbers<[1], [0], [0], [1], [0, 0, 1, 1], [], []>} : vector<8x128xf32>, vector<128x128xf32>, vector<8x128xf32> -> vector<8x128xf32>
    %39 = arith.addf %37, %38 : vector<8x128xf32>
    %40 = math.tanh %39 : vector<8x128xf32>
    %41 = tpu.concatenate %40, %36 in 1 : vector<8x128xf32>, vector<8x128xf32> -> vector<8x256xf32>
    %cst_20 = arith.constant dense<0.000000e+00> : vector<8x128xf32>
    %42 = tpu.matmul %41, %7, %cst_20 {dimension_numbers = #tpu.dot_dimension_numbers<[1], [0], [0], [1], [0, 0, 1, 1], [], []>} : vector<8x256xf32>, vector<256x128xf32>, vector<8x128xf32> -> vector<8x128xf32>
    %43 = arith.addf %42, %10 : vector<8x128xf32>
    %44 = math.tanh %43 : vector<8x128xf32>
    %45 = vector.extract_strided_slice %5 {offsets = [32, 0], sizes = [8, 128], strides = [1, 1]} : vector<64x128xf32> to vector<8x128xf32>
    %cst_21 = arith.constant dense<0.000000e+00> : vector<8x128xf32>
    %46 = tpu.matmul %40, %6, %cst_21 {dimension_numbers = #tpu.dot_dimension_numbers<[1], [0], [0], [1], [0, 0, 1, 1], [], []>} : vector<8x128xf32>, vector<128x128xf32>, vector<8x128xf32> -> vector<8x128xf32>
    %47 = arith.addf %45, %46 : vector<8x128xf32>
    %48 = math.tanh %47 : vector<8x128xf32>
    %49 = tpu.concatenate %48, %44 in 1 : vector<8x128xf32>, vector<8x128xf32> -> vector<8x256xf32>
    %cst_22 = arith.constant dense<0.000000e+00> : vector<8x128xf32>
    %50 = tpu.matmul %49, %7, %cst_22 {dimension_numbers = #tpu.dot_dimension_numbers<[1], [0], [0], [1], [0, 0, 1, 1], [], []>} : vector<8x256xf32>, vector<256x128xf32>, vector<8x128xf32> -> vector<8x128xf32>
    %51 = arith.addf %50, %10 : vector<8x128xf32>
    %52 = math.tanh %51 : vector<8x128xf32>
    %53 = vector.extract_strided_slice %5 {offsets = [40, 0], sizes = [8, 128], strides = [1, 1]} : vector<64x128xf32> to vector<8x128xf32>
    %cst_23 = arith.constant dense<0.000000e+00> : vector<8x128xf32>
    %54 = tpu.matmul %48, %6, %cst_23 {dimension_numbers = #tpu.dot_dimension_numbers<[1], [0], [0], [1], [0, 0, 1, 1], [], []>} : vector<8x128xf32>, vector<128x128xf32>, vector<8x128xf32> -> vector<8x128xf32>
    %55 = arith.addf %53, %54 : vector<8x128xf32>
    %56 = math.tanh %55 : vector<8x128xf32>
    %57 = tpu.concatenate %56, %52 in 1 : vector<8x128xf32>, vector<8x128xf32> -> vector<8x256xf32>
    %cst_24 = arith.constant dense<0.000000e+00> : vector<8x128xf32>
    %58 = tpu.matmul %57, %7, %cst_24 {dimension_numbers = #tpu.dot_dimension_numbers<[1], [0], [0], [1], [0, 0, 1, 1], [], []>} : vector<8x256xf32>, vector<256x128xf32>, vector<8x128xf32> -> vector<8x128xf32>
    %59 = arith.addf %58, %10 : vector<8x128xf32>
    %60 = math.tanh %59 : vector<8x128xf32>
    %61 = vector.extract_strided_slice %5 {offsets = [48, 0], sizes = [8, 128], strides = [1, 1]} : vector<64x128xf32> to vector<8x128xf32>
    %cst_25 = arith.constant dense<0.000000e+00> : vector<8x128xf32>
    %62 = tpu.matmul %56, %6, %cst_25 {dimension_numbers = #tpu.dot_dimension_numbers<[1], [0], [0], [1], [0, 0, 1, 1], [], []>} : vector<8x128xf32>, vector<128x128xf32>, vector<8x128xf32> -> vector<8x128xf32>
    %63 = arith.addf %61, %62 : vector<8x128xf32>
    %64 = math.tanh %63 : vector<8x128xf32>
    %65 = tpu.concatenate %64, %60 in 1 : vector<8x128xf32>, vector<8x128xf32> -> vector<8x256xf32>
    %cst_26 = arith.constant dense<0.000000e+00> : vector<8x128xf32>
    %66 = tpu.matmul %65, %7, %cst_26 {dimension_numbers = #tpu.dot_dimension_numbers<[1], [0], [0], [1], [0, 0, 1, 1], [], []>} : vector<8x256xf32>, vector<256x128xf32>, vector<8x128xf32> -> vector<8x128xf32>
    %67 = arith.addf %66, %10 : vector<8x128xf32>
    %68 = math.tanh %67 : vector<8x128xf32>
    %69 = vector.extract_strided_slice %5 {offsets = [56, 0], sizes = [8, 128], strides = [1, 1]} : vector<64x128xf32> to vector<8x128xf32>
    %cst_27 = arith.constant dense<0.000000e+00> : vector<8x128xf32>
    %70 = tpu.matmul %64, %6, %cst_27 {dimension_numbers = #tpu.dot_dimension_numbers<[1], [0], [0], [1], [0, 0, 1, 1], [], []>} : vector<8x128xf32>, vector<128x128xf32>, vector<8x128xf32> -> vector<8x128xf32>
    %71 = arith.addf %69, %70 : vector<8x128xf32>
    %72 = math.tanh %71 : vector<8x128xf32>
    %73 = tpu.concatenate %72, %68 in 1 : vector<8x128xf32>, vector<8x128xf32> -> vector<8x256xf32>
    %cst_28 = arith.constant dense<0.000000e+00> : vector<8x128xf32>
    %74 = tpu.matmul %73, %7, %cst_28 {dimension_numbers = #tpu.dot_dimension_numbers<[1], [0], [0], [1], [0, 0, 1, 1], [], []>} : vector<8x256xf32>, vector<256x128xf32>, vector<8x128xf32> -> vector<8x128xf32>
    %75 = arith.addf %74, %10 : vector<8x128xf32>
    %76 = math.tanh %75 : vector<8x128xf32>
    %c0_29 = arith.constant 0 : index
    %c0_30 = arith.constant 0 : index
    %77 = vector.load %arg6[%c0_29, %c0_30] : memref<128x128xf32, #tpu.memory_space<vmem>>, vector<128x128xf32>
    %cst_31 = arith.constant dense<0.000000e+00> : vector<8x128xf32>
    %78 = tpu.matmul %76, %77, %cst_31 {dimension_numbers = #tpu.dot_dimension_numbers<[1], [0], [0], [1], [0, 0, 1, 1], [], []>} : vector<8x128xf32>, vector<128x128xf32>, vector<8x128xf32> -> vector<8x128xf32>
    %c0_32 = arith.constant 0 : index
    %c0_33 = arith.constant 0 : index
    %79 = vector.load %arg7[%c0_32, %c0_33] : memref<1x128xf32, #tpu.memory_space<vmem>>, vector<1x128xf32>
    %80 = vector.broadcast %79 : vector<1x128xf32> to vector<8x128xf32>
    %81 = arith.addf %78, %80 : vector<8x128xf32>
    %c0_34 = arith.constant 0 : index
    %c0_35 = arith.constant 0 : index
    %82 = vector.load %arg8[%c0_34, %c0_35] : memref<8x128xf32, #tpu.memory_space<vmem>>, vector<8x128xf32>
    tpu.vector_store %arg8[%c0_34, %c0_35], %81 {strides = array<i32>} : memref<8x128xf32, #tpu.memory_space<vmem>>, vector<8x128xf32>,
    return
  }
}

</mosaic_0001>

<bundles_post_ra>
// kernel: rnn_model_forward.1
= control target key start
LH: loop header
LB: loop body
LE: loop exit
PB: predicated region body
PF: predicated region fallthrough
CT: control target
= control target key end

     0   :  { %vm94_vm0 = vcmask 130048   ;;  %v3010_v24 = vmov 0.0|0.0   ;;  %vm3011_vm1 = vmmov 0   ;;  %s3810_s1 = inlined_call_operand.vmem [shape: f32[272,128], index: 1, kind: input, shape index: {}]   ;;  %s3811_s0 = inlined_call_operand.vmem [shape: f32[64,272], index: 0, kind: input, shape index: {}]   ;;  %s3812_s2 = inlined_call_operand.vmem [shape: f32[128,128], index: 2, kind: input, shape index: {}]   ;;  %s3813_s4 = inlined_call_operand.vmem [shape: f32[256,128], index: 4, kind: input, shape index: {}]   ;;  %s3814_s3 = inlined_call_operand.vmem [shape: f32[1,128], index: 3, kind: input, shape index: {}]   ;;  %s3815_s5 = inlined_call_operand.vmem [shape: f32[1,128], index: 5, kind: input, shape index: {}]   ;;  %s3816_s6 = inlined_call_operand.vmem [shape: f32[128,128], index: 6, kind: input, shape index: {}]   ;;  %s3817_s7 = inlined_call_operand.vmem [shape: f32[1,128], index: 7, kind: input, shape index: {}]   ;;  %s3818_s8 = inlined_call_operand.vmem [shape: f32[8,128], index: 8, kind: output, shape index: {}]  }
   0x1   :  { %v69_v0 = vld [vmem:[%s3810_s1 + $0x80] sm:$0xff]  ;;  %v70_v1 = vld [vmem:[%s3810_s1 + $0x88] sm:$0xff]  ;;  %v71_v9 = vld [vmem:[%s3810_s1 + $0x90] sm:$0xff] }
   0x2   :  { %v53_v2 = vld [vmem:[%s3810_s1] sm:$0xff]  ;;  %v2467_v3 = vpack.c.bf16 %v70_v1, %v69_v0  ;;  %v54_v4 = vld [vmem:[%s3810_s1 + $0x8] sm:$0xff]  ;;  %v72_v10 = vld [vmem:[%s3810_s1 + $0x98] sm:$0xff] }
   0x3   :  { %v85_v5 = vld [vmem:[%s3810_s1 + $0x100] sm:$0xff]  ;;  %v86_v6 = vld [vmem:[%s3810_s1 + $0x108] sm:$0xff]  ;;  %v2469_v7 = vpack.c.bf16 %v54_v4, %v53_v2  ;;  %v55_v11 = vld [vmem:[%s3810_s1 + $0x10] sm:$0xff]  ;;  %v2471_v12 = vpack.c.bf16 %v72_v10, %v71_v9 }
   0x4   :  { %v2499_v8 = vpack.c.bf16 %v86_v6, %v85_v5  ;;  %2468 = vmatprep.subr.bf16.mxu0 %v2467_v3  ;;  %v56_v13 = vld [vmem:[%s3810_s1 + $0x18] sm:$0xff]  ;;  %v31_v14 = vld [vmem:[%s3811_s0 + $0x10] sm:$0xff]  ;;  %v34_v15 = vld [vmem:[%s3811_s0 + $0x28] sm:$0xff] }
   0x5   :  { %2470 = vmatpush3.bf16.msra.mxu0 %v2469_v7  ;;  %v2473_v16 = vpack.c.bf16 %v56_v13, %v55_v11  ;;  %v329_v17 = vld [vmem:[%s3812_s2] sm:$0xff]  ;;  %v330_v18 = vld [vmem:[%s3812_s2 + $0x8] sm:$0xff]  ;;  %2140 = vmatprep.mubr.msk.f32.mxu1 %vm94_vm0, %v31_v14  ;;  %v331_v26 = vld [vmem:[%s3812_s2 + $0x10] sm:$0xff] }
   0x6   :  { %2500 = vmatprep.subr.bf16.mxu1 %v2499_v8  ;;  %v73_v19 = vld [vmem:[%s3810_s1 + $0xa0] sm:$0xff]  ;;  %2472 = vmatprep.subr.bf16.mxu0 %v2471_v12  ;;  %v3103_v20 = vpack.c.bf16 %v330_v18, %v329_v17  ;;  %v74_v21 = vld [vmem:[%s3810_s1 + $0xa8] sm:$0xff]  ;;  %v332_v27 = vld [vmem:[%s3812_s2 + $0x18] sm:$0xff] }
   0x7   :  { %2502 = vmatpush3.bf16.msra.mxu1 %v2499_v8  ;;  %v57_v22 = vld [vmem:[%s3810_s1 + $0x20] sm:$0xff]  ;;  %v58_v23 = vld [vmem:[%s3810_s1 + $0x28] sm:$0xff]  ;;  %v2475_v25 = vpack.c.bf16 %v74_v21, %v73_v19  ;;  %v75_v28 = vld [vmem:[%s3810_s1 + $0xb0] sm:$0xff]  ;;  %v3130_v31 = vpack.c.bf16 %v332_v27, %v331_v26 }
   0x8   :  { %2503 = vmatprep.subr.bf16.mxu1 %v3010_v24  ;;  %v76_v29 = vld [vmem:[%s3810_s1 + $0xb8] sm:$0xff]  ;;  %v2477_v30 = vpack.c.bf16 %v58_v23, %v57_v22  ;;  %v59_v33 = vld [vmem:[%s3810_s1 + $0x30] sm:$0xff]  ;;  %v333_v35 = vld [vmem:[%s3812_s2 + $0x20] sm:$0xff] }
   0x9   :  { %2474 = vmatpush3.bf16.msra.mxu0 %v2473_v16  ;;  %v2479_v32 = vpack.c.bf16 %v76_v29, %v75_v28  ;;  %v60_v34 = vld [vmem:[%s3810_s1 + $0x38] sm:$0xff]  ;;  %v334_v36 = vld [vmem:[%s3812_s2 + $0x28] sm:$0xff]  ;;  %v77_v37 = vld [vmem:[%s3810_s1 + $0xc0] sm:$0xff]  ;;  %v3012_v16 = vmov 0.0  }
   0xa   :  { %2141 = vmatmul.mubr.msk.f32.vlgmr.msra.gmra.mrb[0].mxu1 %vm94_vm0, %v34_v15  ;;  %2476 = vmatprep.subr.bf16.mxu0 %v2475_v25  ;;  %v78_v38 = vld [vmem:[%s3810_s1 + $0xc8] sm:$0xff]  ;;  %v2481_v39 = vpack.c.bf16 %v60_v34, %v59_v33  ;;  %v61_v40 = vld [vmem:[%s3810_s1 + $0x40] sm:$0xff]  ;;  %v3158_v42 = vpack.c.bf16 %v334_v36, %v333_v35  ;;  %v335_v44 = vld [vmem:[%s3812_s2 + $0x30] sm:$0xff] }
   0xb   :  { %2505 = vmatpush3.bf16.msra.mxu1 %v3103_v20  ;;  %v62_v41 = vld [vmem:[%s3810_s1 + $0x48] sm:$0xff]  ;;  %v2483_v43 = vpack.c.bf16 %v78_v38, %v77_v37  ;;  %v336_v45 = vld [vmem:[%s3812_s2 + $0x38] sm:$0xff]  ;;  %v79_v46 = vld [vmem:[%s3810_s1 + $0xd0] sm:$0xff] }
   0xc   :  { %2506 = vmatprep.subr.bf16.mxu1 %v3010_v24  ;;  %v80_v47 = vld [vmem:[%s3810_s1 + $0xd8] sm:$0xff]  ;;  %v37_v48 = vld [vmem:[%s3811_s0 + $0x40] sm:$0xff]  ;;  %v2485_v50 = vpack.c.bf16 %v62_v41, %v61_v40  ;;  %v63_v51 = vld [vmem:[%s3810_s1 + $0x50] sm:$0xff]  ;;  %v3191_v54 = vpack.c.bf16 %v336_v45, %v335_v44 }
   0xd   :  { %2478 = vmatpush3.bf16.msra.mxu0 %v2477_v30  ;;  %v40_v49 = vld [vmem:[%s3811_s0 + $0x58] sm:$0xff]  ;;  %2143 = vmatprep.mubr.msk.f32.mxu1 %vm94_vm0, %v37_v48  ;;  %v43_v53 = vld [vmem:[%s3811_s0 + $0x70] sm:$0xff]  ;;  %v2487_v55 = vpack.c.bf16 %v80_v47, %v79_v46  ;;  %v337_v56 = vld [vmem:[%s3812_s2 + $0x40] sm:$0xff] }
   0xe   :  { %2480 = vmatprep.subr.bf16.mxu0 %v2479_v32  ;;  %v64_v52 = vld [vmem:[%s3810_s1 + $0x58] sm:$0xff]  ;;  %2144 = vmatmul.mubr.msk.f32.gmra.mrb[2].mxu1 %vm94_vm0, %v40_v49  ;;  %v46_v57 = vld [vmem:[%s3811_s0 + $0x88] sm:$0xff]  ;;  %v81_v60 = vld [vmem:[%s3810_s1 + $0xe0] sm:$0xff] }
   0xf   :  { %2508 = vmatpush3.bf16.msra.mxu1 %v3130_v31  ;;  %v30_v58 = vld [vmem:[%s3811_s0 + $0x8] sm:$0xff]  ;;  %2146 = vmatprep.mubr.msk.f32.mxu1 %vm94_vm0, %v43_v53  ;;  %v49_v62 = vld [vmem:[%s3811_s0 + $0xa0] sm:$0xff]  ;;  %v2489_v63 = vpack.c.bf16 %v64_v52, %v63_v51  ;;  %v339_v4 = vld [vmem:[%s3812_s2 + $0x50] sm:$0xff] }
  0x10   :  { %2509 = vmatprep.subr.bf16.mxu1 %v3010_v24  ;;  %v338_v59 = vld [vmem:[%s3812_s2 + $0x48] sm:$0xff]  ;;  %183 = vmatprep.mubr.f32.mxu0 %v30_v58  ;;  %v65_v0 = vld [vmem:[%s3810_s1 + $0x60] sm:$0xff]  ;;  %v52_v5 = vld [vmem:[%s3811_s0 + $0xb8] sm:$0xff] }
  0x11   :  { %2482 = vmatpush3.bf16.msra.mxu0 %v2481_v39  ;;  %v82_v61 = vld [vmem:[%s3810_s1 + $0xe8] sm:$0xff]  ;;  %v3221_v1 = vpack.c.bf16 %v338_v59, %v337_v56  ;;  %v340_v6 = vld [vmem:[%s3812_s2 + $0x58] sm:$0xff]  ;;  %v83_v7 = vld [vmem:[%s3810_s1 + $0xf0] sm:$0xff] }
  0x12   :  { %2484 = vmatprep.subr.bf16.mxu0 %v2483_v43  ;;  %2147 = vmatmul.mubr.msk.f32.gmra.mrb[4].mxu1 %vm94_vm0, %v46_v57  ;;  %v2491_v2 = vpack.c.bf16 %v82_v61, %v81_v60  ;;  %v66_v3 = vld [vmem:[%s3810_s1 + $0x68] sm:$0xff]  ;;  %v84_v8 = vld [vmem:[%s3810_s1 + $0xf8] sm:$0xff]  ;;  %v3245_v10 = vpack.c.bf16 %v340_v6, %v339_v4  ;;  %v67_v12 = vld [vmem:[%s3810_s1 + $0x70] sm:$0xff] }
  0x13   :  { %2511 = vmatpush3.bf16.msra.mxu1 %v3158_v42  ;;  %2149 = vmatprep.mubr.msk.f32.mxu1 %vm94_vm0, %v49_v62  ;;  %v2493_v9 = vpack.c.bf16 %v66_v3, %v65_v0  ;;  %v2495_v11 = vpack.c.bf16 %v84_v8, %v83_v7  ;;  %v68_v13 = vld [vmem:[%s3810_s1 + $0x78] sm:$0xff]  ;;  %v341_v14 = vld [vmem:[%s3812_s2 + $0x60] sm:$0xff]  ;;  %v342_v15 = vld [vmem:[%s3812_s2 + $0x68] sm:$0xff] }
  0x14   :  { %2512 = vmatprep.subr.bf16.mxu1 %v3010_v24  ;;  %v2497_v17 = vpack.c.bf16 %v68_v13, %v67_v12  ;;  %v3263_v18 = vpack.c.bf16 %v342_v15, %v341_v14  ;;  %v343_v19 = vld [vmem:[%s3812_s2 + $0x70] sm:$0xff]  ;;  %v344_v21 = vld [vmem:[%s3812_s2 + $0x78] sm:$0xff]  ;;  %v29_v22 = vld [vmem:[%s3811_s0] sm:$0xff] }
  0x15   :  { %2486 = vmatpush3.bf16.msra.mxu0 %v2485_v50  ;;  %v33_v23 = vld [vmem:[%s3811_s0 + $0x20] sm:$0xff]  ;;  %v3279_v25 = vpack.c.bf16 %v344_v21, %v343_v19  ;;  %v32_v26 = vld [vmem:[%s3811_s0 + $0x18] sm:$0xff]  ;;  %v35_v28 = vld [vmem:[%s3811_s0 + $0x30] sm:$0xff] }
  0x16   :  { %2488 = vmatprep.subr.bf16.mxu0 %v2487_v55  ;;  %2150 = vmatmul.mubr.msk.f32.gmra.mrb[6].mxu1 %vm94_vm0, %v52_v5  ;;  %v36_v27 = vld [vmem:[%s3811_s0 + $0x38] sm:$0xff]  ;;  %v39_v29 = vld [vmem:[%s3811_s0 + $0x50] sm:$0xff]  ;;  %v38_v30 = vld [vmem:[%s3811_s0 + $0x48] sm:$0xff] }
  0x17   :  { %2514 = vmatpush3.bf16.msra.mxu1 %v3191_v54  ;;  %2184 = vmatprep.mubr.msk.f32.mxu1 %vm3011_vm1, %v3012_v16  ;;  %v42_v32 = vld [vmem:[%s3811_s0 + $0x68] sm:$0xff]  ;;  %v41_v33 = vld [vmem:[%s3811_s0 + $0x60] sm:$0xff]  ;;  %v44_v35 = vld [vmem:[%s3811_s0 + $0x78] sm:$0xff] }
  0x18   :  { %2515 = vmatprep.subr.bf16.mxu1 %v3010_v24  ;;  %v45_v34 = vld [vmem:[%s3811_s0 + $0x80] sm:$0xff]  ;;  %v48_v36 = vld [vmem:[%s3811_s0 + $0x98] sm:$0xff]  ;;  %v47_v37 = vld [vmem:[%s3811_s0 + $0x90] sm:$0xff] }
  0x19   :  { %2490 = vmatpush3.bf16.msra.mxu0 %v2489_v63  ;;  %v51_v38 = vld [vmem:[%s3811_s0 + $0xb0] sm:$0xff]  ;;  %v50_v39 = vld [vmem:[%s3811_s0 + $0xa8] sm:$0xff]  ;;  %v361_v40 = vld [vmem:[%s3813_s4 + $0x80] sm:$0xff] }
  0x1a   :  { %2492 = vmatprep.subr.bf16.mxu0 %v2491_v2  ;;  %v362_v41 = vld [vmem:[%s3813_s4 + $0x88] sm:$0xff]  ;;  %v345_v43 = vld [vmem:[%s3813_s4] sm:$0xff]  ;;  %v363_v46 = vld [vmem:[%s3813_s4 + $0x90] sm:$0xff] }
  0x1b   :  { %2517 = vmatpush3.bf16.msra.mxu1 %v3221_v1  ;;  %v3352_v44 = vpack.c.bf16 %v362_v41, %v361_v40  ;;  %v346_v45 = vld [vmem:[%s3813_s4 + $0x8] sm:$0xff]  ;;  %v364_v47 = vld [vmem:[%s3813_s4 + $0x98] sm:$0xff]  ;;  %v347_v50 = vld [vmem:[%s3813_s4 + $0x10] sm:$0xff] }
  0x1c   :  { %2518 = vmatprep.subr.bf16.mxu1 %v3010_v24  ;;  %v3363_v48 = vpack.c.bf16 %v346_v45, %v345_v43  ;;  %v3365_v49 = vpack.c.bf16 %v364_v47, %v363_v46  ;;  %v348_v51 = vld [vmem:[%s3813_s4 + $0x18] sm:$0xff]  ;;  %v365_v53 = vld [vmem:[%s3813_s4 + $0xa0] sm:$0xff]  ;;  %v366_v55 = vld [vmem:[%s3813_s4 + $0xa8] sm:$0xff] }
  0x1d   :  { %2494 = vmatpush3.bf16.msra.mxu0 %v2493_v9  ;;  %v3375_v52 = vpack.c.bf16 %v348_v51, %v347_v50  ;;  %v349_v56 = vld [vmem:[%s3813_s4 + $0x20] sm:$0xff]  ;;  %v3388_v57 = vpack.c.bf16 %v366_v55, %v365_v53  ;;  %v350_v58 = vld [vmem:[%s3813_s4 + $0x28] sm:$0xff]  ;;  %v367_v60 = vld [vmem:[%s3813_s4 + $0xb0] sm:$0xff] }
  0x1e   :  { %2496 = vmatprep.subr.bf16.mxu0 %v2495_v11  ;;  %v3393_v59 = vpack.c.bf16 %v350_v58, %v349_v56  ;;  %v368_v61 = vld [vmem:[%s3813_s4 + $0xb8] sm:$0xff]  ;;  %v351_v63 = vld [vmem:[%s3813_s4 + $0x30] sm:$0xff]  ;;  %v369_v3 = vld [vmem:[%s3813_s4 + $0xc0] sm:$0xff] }
  0x1f   :  { %2520 = vmatpush3.bf16.msra.mxu1 %v3245_v10  ;;  %v3403_v62 = vpack.c.bf16 %v368_v61, %v367_v60  ;;  %v352_v0 = vld [vmem:[%s3813_s4 + $0x38] sm:$0xff]  ;;  %v370_v4 = vld [vmem:[%s3813_s4 + $0xc8] sm:$0xff]  ;;  %v353_v6 = vld [vmem:[%s3813_s4 + $0x40] sm:$0xff] }
  0x20   :  { %2521 = vmatprep.subr.bf16.mxu1 %v3010_v24  ;;  %v3411_v2 = vpack.c.bf16 %v352_v0, %v351_v63  ;;  %v3421_v5 = vpack.c.bf16 %v370_v4, %v369_v3  ;;  %v354_v7 = vld [vmem:[%s3813_s4 + $0x48] sm:$0xff]  ;;  %v371_v9 = vld [vmem:[%s3813_s4 + $0xd0] sm:$0xff]  ;;  %v372_v11 = vld [vmem:[%s3813_s4 + $0xd8] sm:$0xff] }
  0x21   :  { %2498 = vmatpush3.bf16.msra.mxu0 %v2497_v17  ;;  %v3429_v8 = vpack.c.bf16 %v354_v7, %v353_v6  ;;  %v3439_v12 = vpack.c.bf16 %v372_v11, %v371_v9  ;;  %v355_v13 = vld [vmem:[%s3813_s4 + $0x50] sm:$0xff]  ;;  %v356_v14 = vld [vmem:[%s3813_s4 + $0x58] sm:$0xff]  ;;  %v373_v17 = vld [vmem:[%s3813_s4 + $0xe0] sm:$0xff] }
  0x22   :  { %2528 = vmatprep.subr.bf16.mxu0 %v3352_v44  ;;  %v3447_v15 = vpack.c.bf16 %v356_v14, %v355_v13  ;;  %v374_v19 = vld [vmem:[%s3813_s4 + $0xe8] sm:$0xff]  ;;  %v1626_v45 = vld [vmem:[%s3814_s3] ss:$0 sm:$0xff] }
  0x23   :  { %2523 = vmatpush3.bf16.msra.mxu1 %v3263_v18  ;;  %v3457_v21 = vpack.c.bf16 %v374_v19, %v373_v17 }
  0x24   :  { %2524 = vmatprep.subr.bf16.mxu1 %v3010_v24  ;;  %184 = vmatmul.mubr.f32.vlgmr.msra.gmra.mrb[0].mxu0 %v29_v22  ;;  %v357_v22 = vld [vmem:[%s3813_s4 + $0x60] sm:$0xff] }
  0x25   :  { %188 = vmatprep.mubr.f32.mxu0 %v33_v23  ;;  %2530 = vmatpush3.bf16.msra.mxu0 %v3363_v48  ;;  %v358_v23 = vld [vmem:[%s3813_s4 + $0x68] sm:$0xff] }
  0x26   :  { %2532 = vmatprep.subr.bf16.mxu0 %v3365_v49 }
  0x27   :  { %2526 = vmatpush3.bf16.msra.mxu1 %v3279_v25 }
  0x28   :  { %2559 = vmatprep.subr.bf16.mxu1 %v3010_v24  ;;  %189 = vmatmul.mubr.f32.gmra.mrb[2].mxu0 %v32_v26  ;;  %v3465_v26 = vpack.c.bf16 %v358_v23, %v357_v22 }
  0x29   :  { %193 = vmatprep.mubr.f32.mxu0 %v36_v27  ;;  %2534 = vmatpush3.bf16.msra.mxu0 %v3375_v52  ;;  %v375_v27 = vld [vmem:[%s3813_s4 + $0xf0] sm:$0xff] }
  0x2a   :  { %2185 = vmatmul.mubr.f32.vlgmr.msra.gmra.mrb[8].mxu1 %v3012_v16  ;;  %2536 = vmatprep.subr.bf16.mxu0 %v3388_v57 }
  0x2b   :  { %2561 = vmatpush3.bf16.msra.mxu1 %v3103_v20  ;;  %2219 = vmatprep.mubr.msk.f32.mxu1 %vm3011_vm1, %v3012_v16 }
  0x2c   :  { %2562 = vmatprep.subr.bf16.mxu1 %v3010_v24  ;;  %194 = vmatmul.mubr.f32.gmra.mrb[4].mxu0 %v35_v28  ;;  %v376_v28 = vld [vmem:[%s3813_s4 + $0xf8] sm:$0xff] }
  0x2d   :  { %198 = vmatprep.mubr.f32.mxu0 %v39_v29  ;;  %2538 = vmatpush3.bf16.msra.mxu0 %v3393_v59  ;;  %v3475_v29 = vpack.c.bf16 %v376_v28, %v375_v27 }
  0x2e   :  { %2540 = vmatprep.subr.bf16.mxu0 %v3403_v62 }
  0x2f   :  { %2564 = vmatpush3.bf16.msra.mxu1 %v3130_v31 }
  0x30   :  { %2565 = vmatprep.subr.bf16.mxu1 %v3010_v24  ;;  %199 = vmatmul.mubr.f32.gmra.mrb[6].mxu0 %v38_v30  ;;  %v359_v30 = vld [vmem:[%s3813_s4 + $0x70] sm:$0xff] }
  0x31   :  { %203 = vmatprep.mubr.f32.mxu0 %v42_v32  ;;  %2542 = vmatpush3.bf16.msra.mxu0 %v3411_v2  ;;  %v360_v32 = vld [vmem:[%s3813_s4 + $0x78] sm:$0xff] }
  0x32   :  { %2544 = vmatprep.subr.bf16.mxu0 %v3421_v5 }
  0x33   :  { %2567 = vmatpush3.bf16.msra.mxu1 %v3158_v42 }
  0x34   :  { %2568 = vmatprep.subr.bf16.mxu1 %v3010_v24  ;;  %204 = vmatmul.mubr.f32.gmra.mrb[8].mxu0 %v41_v33  ;;  %v3483_v33 = vpack.c.bf16 %v360_v32, %v359_v30 }
  0x35   :  { %208 = vmatprep.mubr.f32.mxu0 %v45_v34  ;;  %2546 = vmatpush3.bf16.msra.mxu0 %v3429_v8 }
  0x36   :  { %2548 = vmatprep.subr.bf16.mxu0 %v3439_v12 }
  0x37   :  { %2570 = vmatpush3.bf16.msra.mxu1 %v3191_v54 }
  0x38   :  { %2571 = vmatprep.subr.bf16.mxu1 %v3010_v24  ;;  %209 = vmatmul.mubr.f32.gmra.mrb[10].mxu0 %v44_v35 }
  0x39   :  { %213 = vmatprep.mubr.f32.mxu0 %v48_v36  ;;  %2550 = vmatpush3.bf16.msra.mxu0 %v3447_v15 }
  0x3a   :  { %2552 = vmatprep.subr.bf16.mxu0 %v3457_v21 }
  0x3b   :  { %2573 = vmatpush3.bf16.msra.mxu1 %v3221_v1 }
  0x3c   :  { %2574 = vmatprep.subr.bf16.mxu1 %v3010_v24  ;;  %214 = vmatmul.mubr.f32.gmra.mrb[12].mxu0 %v47_v37 }
  0x3d   :  { %218 = vmatprep.mubr.f32.mxu0 %v51_v38  ;;  %2554 = vmatpush3.bf16.msra.mxu0 %v3465_v26 }
  0x3e   :  { %2556 = vmatprep.subr.bf16.mxu0 %v3475_v29 }
  0x3f   :  { %2576 = vmatpush3.bf16.msra.mxu1 %v3245_v10 }
  0x40   :  { %2577 = vmatprep.subr.bf16.mxu1 %v3010_v24  ;;  %219 = vmatmul.mubr.f32.gmra.mrb[14].mxu0 %v50_v39 }
  0x41   :  { %520 = vmatprep.mubr.f32.mxu0 %v3012_v16  ;;  %2558 = vmatpush3.bf16.msra.mxu0 %v3483_v33 }
  0x42   :  { %2584 = vmatprep.subr.bf16.mxu0 %v3352_v44 }
  0x43   :  { %2579 = vmatpush3.bf16.msra.mxu1 %v3263_v18 }
  0x44   :  { %2580 = vmatprep.subr.bf16.mxu1 %v3010_v24 }
  0x47   :  { %2582 = vmatpush3.bf16.msra.mxu1 %v3279_v25 }
  0x48   :  { %2615 = vmatprep.subr.bf16.mxu1 %v3010_v24 }
  0xdd   :  { %v2142_v34 = vpop.f32.mrb[0].mxu1 }
  0xde   :  { %v290_v35 = vpop.f32.mrb[1].mxu1 }
  0xe1   :  { %v2145_v36 = vpop.f32.mrb[2].mxu1 }
  0xe2   :  { %v300_v37 = vpop.f32.mrb[3].mxu1 }
  0xe5   :  { %v2148_v38 = vpop.f32.mrb[4].mxu1 }
  0xe6   :  { %v310_v39 = vpop.f32.mrb[5].mxu1 }
  0xe9   :  { %v3488_v40 = vpop.f32.mrb[6].mxu1 }
  0xea   :  { %v320_v41 = vpop.f32.mrb[7].mxu1 }
  0xf7   :  { %v1669_v43 = vpop.f32.mrb[0].mxu0 }
  0xf8   :  { %v1670_v46 = vpop.f32.mrb[1].mxu0 }
  0xf9   :  { %v1671_v47 = vadd.f32 %v1670_v46, %v1669_v43 }
  0xfb   :  { %v186_v50 = vadd.f32 %v1671_v47, %v1626_v45  ;;  %v1672_v51 = vpop.f32.mrb[2].mxu0 }
  0xfc   :  { %v1673_v53 = vpop.f32.mrb[3].mxu0 }
  0xfd   :  { %v450_v55 = vpop.f32.mrb[8].mxu1  ;;  %v1674_v56 = vadd.f32 %v1673_v53, %v1672_v51  ;;  %v291_v58 = vadd.f32 %v290_v35, %v186_v50 }
  0xfe   :  { %v2186_v60 = vpop.f32.mrb[9].mxu1 }
  0xff   :  { %v191_v61 = vadd.f32 %v1674_v56, %v1626_v45  ;;  %v454_v63 = vadd.f32 %v450_v55, %v291_v58  ;;  %v1675_v0 = vpop.f32.mrb[4].mxu0  ;;  %v3546_v60 = vld [vmem:[%s3815_s5] ss:$0 sm:$0xff] }
 0x100   :  { %v1676_v3 = vpop.f32.mrb[5].mxu0 }
 0x101   :  { %2978 = vtanh.f32 %v454_v63  ;;  %v1677_v4 = vadd.f32 %v1676_v3, %v1675_v0  ;;  %v3493_v6 = vadd.f32 %v2142_v34, %v191_v61 }
 0x103   :  { %v196_v7 = vadd.f32 %v1677_v4, %v1626_v45  ;;  %v1678_v9 = vpop.f32.mrb[6].mxu0 }
 0x104   :  { %v1679_v11 = vpop.f32.mrb[7].mxu0 }
 0x105   :  { %v1680_v13 = vadd.f32 %v1679_v11, %v1678_v9  ;;  %v3495_v14 = vadd.f32 %v300_v37, %v196_v7 }
 0x107   :  { %v201_v17 = vadd.f32 %v1680_v13, %v1626_v45  ;;  %v1681_v19 = vpop.f32.mrb[8].mxu0 }
 0x108   :  { %v1682_v22 = vpop.f32.mrb[9].mxu0 }
 0x109   :  { %v1683_v23 = vadd.f32 %v1682_v22, %v1681_v19  ;;  %v3497_v27 = vadd.f32 %v2145_v36, %v201_v17 }
 0x10b   :  { %v2979_v28 = vpop.eup %2978  ;;  %v206_v30 = vadd.f32 %v1683_v23, %v1626_v45  ;;  %v1684_v32 = vpop.f32.mrb[10].mxu0 }
 0x10c   :  { %v1685_v35 = vpop.f32.mrb[11].mxu0  ;;  %521 = vmatmul.mubr.f32.vlgmr.msra.gmra.mrb[16].mxu0 %v2979_v28  ;;  %2220 = vmatmul.mubr.f32.vlgmr.msra.gmra.mrb[10].mxu1 %v2979_v28 }
 0x10d   :  { %v1686_v34 = vadd.f32 %v1685_v35, %v1684_v32  ;;  %2617 = vmatpush3.bf16.msra.mxu1 %v3103_v20  ;;  %2586 = vmatpush3.bf16.msra.mxu0 %v3363_v48  ;;  %v3501_v43 = vadd.f32 %v310_v39, %v206_v30 }
 0x10e   :  { %2618 = vmatprep.subr.bf16.mxu1 %v3010_v24  ;;  %2588 = vmatprep.subr.bf16.mxu0 %v3365_v49 }
 0x10f   :  { %v211_v37 = vadd.f32 %v1686_v34, %v1626_v45  ;;  %v1687_v36 = vpop.f32.mrb[12].mxu0  ;;  %2254 = vmatprep.mubr.msk.f32.mxu1 %vm3011_vm1, %v3012_v16 }
 0x110   :  { %v1688_v46 = vpop.f32.mrb[13].mxu0 }
 0x111   :  { %v1689_v47 = vadd.f32 %v1688_v46, %v1687_v36  ;;  %2620 = vmatpush3.bf16.msra.mxu1 %v3130_v31  ;;  %2590 = vmatpush3.bf16.msra.mxu0 %v3375_v52  ;;  %v3509_v50 = vadd.f32 %v2148_v38, %v211_v37 }
 0x112   :  { %2621 = vmatprep.subr.bf16.mxu1 %v3010_v24  ;;  %2592 = vmatprep.subr.bf16.mxu0 %v3388_v57 }
 0x113   :  { %v216_v39 = vadd.f32 %v1689_v47, %v1626_v45  ;;  %v1690_v51 = vpop.f32.mrb[14].mxu0 }
 0x114   :  { %v1691_v53 = vpop.f32.mrb[15].mxu0 }
 0x115   :  { %v1692_v55 = vadd.f32 %v1691_v53, %v1690_v51  ;;  %2623 = vmatpush3.bf16.msra.mxu1 %v3158_v42  ;;  %2594 = vmatpush3.bf16.msra.mxu0 %v3393_v59  ;;  %v3515_v56 = vadd.f32 %v320_v41, %v216_v39 }
 0x116   :  { %2624 = vmatprep.subr.bf16.mxu1 %v3010_v24  ;;  %2596 = vmatprep.subr.bf16.mxu0 %v3403_v62 }
 0x117   :  { %v221_v38 = vadd.f32 %v1692_v55, %v1626_v45 }
 0x119   :  { %2626 = vmatpush3.bf16.msra.mxu1 %v3191_v54  ;;  %2598 = vmatpush3.bf16.msra.mxu0 %v3411_v2  ;;  %v3522_v58 = vadd.f32 %v3488_v40, %v221_v38 }
 0x11a   :  { %2627 = vmatprep.subr.bf16.mxu1 %v3010_v24  ;;  %2600 = vmatprep.subr.bf16.mxu0 %v3421_v5 }
 0x11d   :  { %2629 = vmatpush3.bf16.msra.mxu1 %v3221_v1  ;;  %2602 = vmatpush3.bf16.msra.mxu0 %v3429_v8 }
 0x11e   :  { %2630 = vmatprep.subr.bf16.mxu1 %v3010_v24  ;;  %2604 = vmatprep.subr.bf16.mxu0 %v3439_v12 }
 0x121   :  { %2632 = vmatpush3.bf16.msra.mxu1 %v3245_v10  ;;  %2606 = vmatpush3.bf16.msra.mxu0 %v3447_v15 }
 0x122   :  { %2633 = vmatprep.subr.bf16.mxu1 %v3010_v24  ;;  %2608 = vmatprep.subr.bf16.mxu0 %v3457_v21 }
 0x125   :  { %2635 = vmatpush3.bf16.msra.mxu1 %v3263_v18  ;;  %2610 = vmatpush3.bf16.msra.mxu0 %v3465_v26 }
 0x126   :  { %2636 = vmatprep.subr.bf16.mxu1 %v3010_v24  ;;  %2612 = vmatprep.subr.bf16.mxu0 %v3475_v29 }
 0x129   :  { %2638 = vmatpush3.bf16.msra.mxu1 %v3279_v25  ;;  %2614 = vmatpush3.bf16.msra.mxu0 %v3483_v33 }
 0x12a   :  { %2671 = vmatprep.subr.bf16.mxu1 %v3010_v24  ;;  %2640 = vmatprep.subr.bf16.mxu0 %v3352_v44 }
 0x1df   :  { %v1752_v40 = vpop.f32.mrb[16].mxu0  ;;  %v593_v41 = vpop.f32.mrb[10].mxu1 }
 0x1e0   :  { %v597_v45 = vadd.f32 %v593_v41, %v3493_v6  ;;  %v1753_v61 = vpop.f32.mrb[17].mxu0  ;;  %v2221_v63 = vpop.f32.mrb[11].mxu1 }
 0x1e1   :  { %v1754_v0 = vadd.f32 %v1753_v61, %v1752_v40 }
 0x1e2   :  { %2980 = vtanh.f32 %v597_v45 }
 0x1e3   :  { %v523_v3 = vadd.f32 %v1754_v0, %v3546_v60 }
 0x1e5   :  { %2982 = vtanh.f32 %v523_v3 }
 0x1ec   :  { %v2981_v4 = vpop.eup %2980 }
 0x1ed   :  { %2255 = vmatmul.mubr.f32.vlgmr.msra.gmra.mrb[12].mxu1 %v2981_v4 }
 0x1ee   :  { %2673 = vmatpush3.bf16.msra.mxu1 %v3103_v20  ;;  %2289 = vmatprep.mubr.msk.f32.mxu1 %vm3011_vm1, %v3012_v16 }
 0x1ef   :  { %v2983_v6 = vpop.eup %2982  ;;  %2674 = vmatprep.subr.bf16.mxu1 %v3010_v24 }
 0x1f0   :  { %663 = vmatprep.mubr.f32.mxu0 %v2983_v6 }
 0x1f1   :  { %664 = vmatmul.mubr.f32.vlgmr.msra.gmra.mrb[18].mxu0 %v2981_v4 }
 0x1f2   :  { %2676 = vmatpush3.bf16.msra.mxu1 %v3130_v31  ;;  %2642 = vmatpush3.bf16.msra.mxu0 %v3363_v48 }
 0x1f3   :  { %2677 = vmatprep.subr.bf16.mxu1 %v3010_v24  ;;  %2644 = vmatprep.subr.bf16.mxu0 %v3365_v49 }
 0x1f6   :  { %2679 = vmatpush3.bf16.msra.mxu1 %v3158_v42  ;;  %2646 = vmatpush3.bf16.msra.mxu0 %v3375_v52 }
 0x1f7   :  { %2680 = vmatprep.subr.bf16.mxu1 %v3010_v24  ;;  %2648 = vmatprep.subr.bf16.mxu0 %v3388_v57 }
 0x1fa   :  { %2682 = vmatpush3.bf16.msra.mxu1 %v3191_v54  ;;  %2650 = vmatpush3.bf16.msra.mxu0 %v3393_v59 }
 0x1fb   :  { %2683 = vmatprep.subr.bf16.mxu1 %v3010_v24  ;;  %2652 = vmatprep.subr.bf16.mxu0 %v3403_v62 }
 0x1fe   :  { %2685 = vmatpush3.bf16.msra.mxu1 %v3221_v1  ;;  %2654 = vmatpush3.bf16.msra.mxu0 %v3411_v2 }
 0x1ff   :  { %2686 = vmatprep.subr.bf16.mxu1 %v3010_v24  ;;  %2656 = vmatprep.subr.bf16.mxu0 %v3421_v5 }
 0x202   :  { %2688 = vmatpush3.bf16.msra.mxu1 %v3245_v10  ;;  %2658 = vmatpush3.bf16.msra.mxu0 %v3429_v8 }
 0x203   :  { %2689 = vmatprep.subr.bf16.mxu1 %v3010_v24  ;;  %2660 = vmatprep.subr.bf16.mxu0 %v3439_v12 }
 0x206   :  { %2691 = vmatpush3.bf16.msra.mxu1 %v3263_v18  ;;  %2662 = vmatpush3.bf16.msra.mxu0 %v3447_v15 }
 0x207   :  { %2692 = vmatprep.subr.bf16.mxu1 %v3010_v24  ;;  %2664 = vmatprep.subr.bf16.mxu0 %v3457_v21 }
 0x20a   :  { %2694 = vmatpush3.bf16.msra.mxu1 %v3279_v25  ;;  %2666 = vmatpush3.bf16.msra.mxu0 %v3465_v26 }
 0x20b   :  { %2668 = vmatprep.subr.bf16.mxu0 %v3475_v29  ;;  %2727 = vmatprep.subr.bf16.mxu1 %v3010_v24 }
 0x20e   :  { %2670 = vmatpush3.bf16.msra.mxu0 %v3483_v33 }
 0x20f   :  { %2696 = vmatprep.subr.bf16.mxu0 %v3352_v44 }
 0x2c0   :  { %v736_v7 = vpop.f32.mrb[12].mxu1 }
 0x2c1   :  { %v740_v9 = vadd.f32 %v736_v7, %v3495_v14  ;;  %v2256_v11 = vpop.f32.mrb[13].mxu1 }
 0x2c3   :  { %2984 = vtanh.f32 %v740_v9 }
 0x2c4   :  { %v1804_v13 = vpop.f32.mrb[18].mxu0 }
 0x2c5   :  { %v1805_v17 = vpop.f32.mrb[19].mxu0 }
 0x2c6   :  { %v1806_v19 = vadd.f32 %v1805_v17, %v1804_v13 }
 0x2c8   :  { %v666_v22 = vadd.f32 %v1806_v19, %v3546_v60  ;;  %v1536_v19 = vld [vmem:[%s3816_s6 + $0x40] sm:$0xff] }
 0x2ca   :  { %2986 = vtanh.f32 %v666_v22 }
 0x2cd   :  { %v2985_v23 = vpop.eup %2984 }
 0x2ce   :  { %2290 = vmatmul.mubr.f32.vlgmr.msra.gmra.mrb[14].mxu1 %v2985_v23 }
 0x2cf   :  { %2729 = vmatpush3.bf16.msra.mxu1 %v3103_v20  ;;  %2324 = vmatprep.mubr.msk.f32.mxu1 %vm3011_vm1, %v3012_v16 }
 0x2d0   :  { %2730 = vmatprep.subr.bf16.mxu1 %v3010_v24 }
 0x2d3   :  { %2732 = vmatpush3.bf16.msra.mxu1 %v3130_v31 }
 0x2d4   :  { %v2987_v14 = vpop.eup %2986  ;;  %2733 = vmatprep.subr.bf16.mxu1 %v3010_v24 }
 0x2d5   :  { %806 = vmatprep.mubr.f32.mxu0 %v2987_v14  ;;  %v1539_v14 = vld [vmem:[%s3816_s6 + $0x58] sm:$0xff] }
 0x2d6   :  { %807 = vmatmul.mubr.f32.vlgmr.msra.gmra.mrb[20].mxu0 %v2985_v23  ;;  %v1538_v23 = vld [vmem:[%s3816_s6 + $0x50] sm:$0xff] }
 0x2d7   :  { %2735 = vmatpush3.bf16.msra.mxu1 %v3158_v42  ;;  %2698 = vmatpush3.bf16.msra.mxu0 %v3363_v48 }
 0x2d8   :  { %2736 = vmatprep.subr.bf16.mxu1 %v3010_v24  ;;  %2700 = vmatprep.subr.bf16.mxu0 %v3365_v49 }
 0x2db   :  { %2738 = vmatpush3.bf16.msra.mxu1 %v3191_v54  ;;  %2702 = vmatpush3.bf16.msra.mxu0 %v3375_v52 }
 0x2dc   :  { %2739 = vmatprep.subr.bf16.mxu1 %v3010_v24  ;;  %2704 = vmatprep.subr.bf16.mxu0 %v3388_v57 }
 0x2df   :  { %2741 = vmatpush3.bf16.msra.mxu1 %v3221_v1  ;;  %2706 = vmatpush3.bf16.msra.mxu0 %v3393_v59 }
 0x2e0   :  { %2742 = vmatprep.subr.bf16.mxu1 %v3010_v24  ;;  %2708 = vmatprep.subr.bf16.mxu0 %v3403_v62 }
 0x2e3   :  { %2744 = vmatpush3.bf16.msra.mxu1 %v3245_v10  ;;  %2710 = vmatpush3.bf16.msra.mxu0 %v3411_v2 }
 0x2e4   :  { %2745 = vmatprep.subr.bf16.mxu1 %v3010_v24  ;;  %2712 = vmatprep.subr.bf16.mxu0 %v3421_v5 }
 0x2e7   :  { %2747 = vmatpush3.bf16.msra.mxu1 %v3263_v18  ;;  %2714 = vmatpush3.bf16.msra.mxu0 %v3429_v8 }
 0x2e8   :  { %2748 = vmatprep.subr.bf16.mxu1 %v3010_v24  ;;  %2716 = vmatprep.subr.bf16.mxu0 %v3439_v12 }
 0x2eb   :  { %2750 = vmatpush3.bf16.msra.mxu1 %v3279_v25  ;;  %2718 = vmatpush3.bf16.msra.mxu0 %v3447_v15 }
 0x2ec   :  { %2720 = vmatprep.subr.bf16.mxu0 %v3457_v21  ;;  %2783 = vmatprep.subr.bf16.mxu1 %v3010_v24 }
 0x2ef   :  { %2722 = vmatpush3.bf16.msra.mxu0 %v3465_v26 }
 0x2f0   :  { %2724 = vmatprep.subr.bf16.mxu0 %v3475_v29 }
 0x2f3   :  { %2726 = vmatpush3.bf16.msra.mxu0 %v3483_v33 }
 0x2f4   :  { %2752 = vmatprep.subr.bf16.mxu0 %v3352_v44 }
 0x3a1   :  { %v879_v28 = vpop.f32.mrb[14].mxu1 }
 0x3a2   :  { %v883_v30 = vadd.f32 %v879_v28, %v3497_v27  ;;  %v2291_v32 = vpop.f32.mrb[15].mxu1  ;;  %v2967_v28 = vpack.c.bf16 %v1539_v14, %v1538_v23 }
 0x3a3   :  { %v1541_v32 = vld [vmem:[%s3816_s6 + $0x68] sm:$0xff] }
 0x3a4   :  { %2988 = vtanh.f32 %v883_v30  ;;  %v1540_v30 = vld [vmem:[%s3816_s6 + $0x60] sm:$0xff] }
 0x3a9   :  { %v1856_v35 = vpop.f32.mrb[20].mxu0 }
 0x3aa   :  { %v1857_v34 = vpop.f32.mrb[21].mxu0 }
 0x3ab   :  { %v1858_v37 = vadd.f32 %v1857_v34, %v1856_v35  ;;  %v2970_v35 = vpack.c.bf16 %v1541_v32, %v1540_v30  ;;  %v1542_v34 = vld [vmem:[%s3816_s6 + $0x70] sm:$0xff] }
 0x3ad   :  { %v809_v36 = vadd.f32 %v1858_v37, %v3546_v60  ;;  %v1543_v37 = vld [vmem:[%s3816_s6 + $0x78] sm:$0xff] }
 0x3ae   :  { %v2989_v46 = vpop.eup %2988 }
 0x3af   :  { %2990 = vtanh.f32 %v809_v36  ;;  %2325 = vmatmul.mubr.f32.vlgmr.msra.gmra.mrb[16].mxu1 %v2989_v46  ;;  %v2973_v36 = vpack.c.bf16 %v1543_v37, %v1542_v34 }
 0x3b0   :  { %2785 = vmatpush3.bf16.msra.mxu1 %v3103_v20  ;;  %2359 = vmatprep.mubr.msk.f32.mxu1 %vm3011_vm1, %v3012_v16 }
 0x3b1   :  { %2786 = vmatprep.subr.bf16.mxu1 %v3010_v24 }
 0x3b4   :  { %2788 = vmatpush3.bf16.msra.mxu1 %v3130_v31 }
 0x3b5   :  { %2789 = vmatprep.subr.bf16.mxu1 %v3010_v24 }
 0x3b8   :  { %2791 = vmatpush3.bf16.msra.mxu1 %v3158_v42 }
 0x3b9   :  { %v2991_v27 = vpop.eup %2990  ;;  %2792 = vmatprep.subr.bf16.mxu1 %v3010_v24 }
 0x3ba   :  { %949 = vmatprep.mubr.f32.mxu0 %v2991_v27 }
 0x3bb   :  { %950 = vmatmul.mubr.f32.vlgmr.msra.gmra.mrb[22].mxu0 %v2989_v46 }
 0x3bc   :  { %2794 = vmatpush3.bf16.msra.mxu1 %v3191_v54  ;;  %2754 = vmatpush3.bf16.msra.mxu0 %v3363_v48 }
 0x3bd   :  { %2795 = vmatprep.subr.bf16.mxu1 %v3010_v24  ;;  %2756 = vmatprep.subr.bf16.mxu0 %v3365_v49 }
 0x3c0   :  { %2797 = vmatpush3.bf16.msra.mxu1 %v3221_v1  ;;  %2758 = vmatpush3.bf16.msra.mxu0 %v3375_v52 }
 0x3c1   :  { %2798 = vmatprep.subr.bf16.mxu1 %v3010_v24  ;;  %2760 = vmatprep.subr.bf16.mxu0 %v3388_v57 }
 0x3c4   :  { %2800 = vmatpush3.bf16.msra.mxu1 %v3245_v10  ;;  %2762 = vmatpush3.bf16.msra.mxu0 %v3393_v59 }
 0x3c5   :  { %2801 = vmatprep.subr.bf16.mxu1 %v3010_v24  ;;  %2764 = vmatprep.subr.bf16.mxu0 %v3403_v62 }
 0x3c8   :  { %2803 = vmatpush3.bf16.msra.mxu1 %v3263_v18  ;;  %2766 = vmatpush3.bf16.msra.mxu0 %v3411_v2 }
 0x3c9   :  { %2804 = vmatprep.subr.bf16.mxu1 %v3010_v24  ;;  %2768 = vmatprep.subr.bf16.mxu0 %v3421_v5 }
 0x3cc   :  { %2806 = vmatpush3.bf16.msra.mxu1 %v3279_v25  ;;  %2770 = vmatpush3.bf16.msra.mxu0 %v3429_v8 }
 0x3cd   :  { %2772 = vmatprep.subr.bf16.mxu0 %v3439_v12  ;;  %2839 = vmatprep.subr.bf16.mxu1 %v3010_v24 }
 0x3d0   :  { %2774 = vmatpush3.bf16.msra.mxu0 %v3447_v15 }
 0x3d1   :  { %2776 = vmatprep.subr.bf16.mxu0 %v3457_v21 }
 0x3d4   :  { %2778 = vmatpush3.bf16.msra.mxu0 %v3465_v26 }
 0x3d5   :  { %2780 = vmatprep.subr.bf16.mxu0 %v3475_v29 }
 0x3d8   :  { %2782 = vmatpush3.bf16.msra.mxu0 %v3483_v33 }
 0x3d9   :  { %2808 = vmatprep.subr.bf16.mxu0 %v3352_v44 }
 0x482   :  { %v1022_v47 = vpop.f32.mrb[16].mxu1 }
 0x483   :  { %v1026_v39 = vadd.f32 %v1022_v47, %v3501_v43  ;;  %v2326_v51 = vpop.f32.mrb[17].mxu1 }
 0x485   :  { %2992 = vtanh.f32 %v1026_v39 }
 0x48e   :  { %v1908_v53 = vpop.f32.mrb[22].mxu0 }
 0x48f   :  { %v2993_v55 = vpop.eup %2992  ;;  %v1909_v38 = vpop.f32.mrb[23].mxu0 }
 0x490   :  { %v1910_v40 = vadd.f32 %v1909_v38, %v1908_v53  ;;  %2360 = vmatmul.mubr.f32.vlgmr.msra.gmra.mrb[18].mxu1 %v2993_v55  ;;  %v1636_v53 = vld [vmem:[%s3817_s7] ss:$0 sm:$0xff] }
 0x491   :  { %2841 = vmatpush3.bf16.msra.mxu1 %v3103_v20  ;;  %2394 = vmatprep.mubr.msk.f32.mxu1 %vm3011_vm1, %v3012_v16 }
 0x492   :  { %v952_v41 = vadd.f32 %v1910_v40, %v3546_v60  ;;  %2842 = vmatprep.subr.bf16.mxu1 %v3010_v24 }
 0x494   :  { %2994 = vtanh.f32 %v952_v41 }
 0x495   :  { %2844 = vmatpush3.bf16.msra.mxu1 %v3130_v31 }
 0x496   :  { %2845 = vmatprep.subr.bf16.mxu1 %v3010_v24 }
 0x499   :  { %2847 = vmatpush3.bf16.msra.mxu1 %v3158_v42 }
 0x49a   :  { %2848 = vmatprep.subr.bf16.mxu1 %v3010_v24 }
 0x49d   :  { %2850 = vmatpush3.bf16.msra.mxu1 %v3191_v54 }
 0x49e   :  { %v2995_v43 = vpop.eup %2994  ;;  %2851 = vmatprep.subr.bf16.mxu1 %v3010_v24 }
 0x49f   :  { %1092 = vmatprep.mubr.f32.mxu0 %v2995_v43 }
 0x4a0   :  { %1093 = vmatmul.mubr.f32.vlgmr.msra.gmra.mrb[24].mxu0 %v2993_v55 }
 0x4a1   :  { %2853 = vmatpush3.bf16.msra.mxu1 %v3221_v1  ;;  %2810 = vmatpush3.bf16.msra.mxu0 %v3363_v48 }
 0x4a2   :  { %2854 = vmatprep.subr.bf16.mxu1 %v3010_v24  ;;  %2812 = vmatprep.subr.bf16.mxu0 %v3365_v49 }
 0x4a5   :  { %2856 = vmatpush3.bf16.msra.mxu1 %v3245_v10  ;;  %2814 = vmatpush3.bf16.msra.mxu0 %v3375_v52 }
 0x4a6   :  { %2857 = vmatprep.subr.bf16.mxu1 %v3010_v24  ;;  %2816 = vmatprep.subr.bf16.mxu0 %v3388_v57 }
 0x4a9   :  { %2859 = vmatpush3.bf16.msra.mxu1 %v3263_v18  ;;  %2818 = vmatpush3.bf16.msra.mxu0 %v3393_v59 }
 0x4aa   :  { %2860 = vmatprep.subr.bf16.mxu1 %v3010_v24  ;;  %2820 = vmatprep.subr.bf16.mxu0 %v3403_v62 }
 0x4ad   :  { %2862 = vmatpush3.bf16.msra.mxu1 %v3279_v25  ;;  %2822 = vmatpush3.bf16.msra.mxu0 %v3411_v2 }
 0x4ae   :  { %2824 = vmatprep.subr.bf16.mxu0 %v3421_v5  ;;  %2895 = vmatprep.subr.bf16.mxu1 %v3010_v24 }
 0x4b1   :  { %2826 = vmatpush3.bf16.msra.mxu0 %v3429_v8 }
 0x4b2   :  { %2828 = vmatprep.subr.bf16.mxu0 %v3439_v12 }
 0x4b5   :  { %2830 = vmatpush3.bf16.msra.mxu0 %v3447_v15 }
 0x4b6   :  { %2832 = vmatprep.subr.bf16.mxu0 %v3457_v21 }
 0x4b9   :  { %2834 = vmatpush3.bf16.msra.mxu0 %v3465_v26 }
 0x4ba   :  { %2836 = vmatprep.subr.bf16.mxu0 %v3475_v29 }
 0x4bd   :  { %2838 = vmatpush3.bf16.msra.mxu0 %v3483_v33 }
 0x4be   :  { %2864 = vmatprep.subr.bf16.mxu0 %v3352_v44 }
 0x563   :  { %v1165_v45 = vpop.f32.mrb[18].mxu1 }
 0x564   :  { %v1169_v61 = vadd.f32 %v1165_v45, %v3509_v50  ;;  %v2361_v63 = vpop.f32.mrb[19].mxu1 }
 0x566   :  { %2996 = vtanh.f32 %v1169_v61 }
 0x570   :  { %v2997_v0 = vpop.eup %2996 }
 0x571   :  { %2395 = vmatmul.mubr.f32.vlgmr.msra.gmra.mrb[20].mxu1 %v2997_v0 }
 0x572   :  { %2897 = vmatpush3.bf16.msra.mxu1 %v3103_v20  ;;  %2429 = vmatprep.mubr.msk.f32.mxu1 %vm3011_vm1, %v3012_v16 }
 0x573   :  { %v1960_v3 = vpop.f32.mrb[24].mxu0  ;;  %2898 = vmatprep.subr.bf16.mxu1 %v3010_v24 }
 0x574   :  { %v1961_v4 = vpop.f32.mrb[25].mxu0 }
 0x575   :  { %v1962_v6 = vadd.f32 %v1961_v4, %v1960_v3 }
 0x576   :  { %2900 = vmatpush3.bf16.msra.mxu1 %v3130_v31 }
 0x577   :  { %v1095_v7 = vadd.f32 %v1962_v6, %v3546_v60  ;;  %2901 = vmatprep.subr.bf16.mxu1 %v3010_v24 }
 0x579   :  { %2998 = vtanh.f32 %v1095_v7 }
 0x57a   :  { %2903 = vmatpush3.bf16.msra.mxu1 %v3158_v42 }
 0x57b   :  { %2904 = vmatprep.subr.bf16.mxu1 %v3010_v24 }
 0x57e   :  { %2906 = vmatpush3.bf16.msra.mxu1 %v3191_v54 }
 0x57f   :  { %2907 = vmatprep.subr.bf16.mxu1 %v3010_v24 }
 0x582   :  { %2909 = vmatpush3.bf16.msra.mxu1 %v3221_v1 }
 0x583   :  { %v2999_v20 = vpop.eup %2998  ;;  %2910 = vmatprep.subr.bf16.mxu1 %v3010_v24 }
 0x584   :  { %1235 = vmatprep.mubr.f32.mxu0 %v2999_v20 }
 0x585   :  { %1236 = vmatmul.mubr.f32.vlgmr.msra.gmra.mrb[26].mxu0 %v2997_v0 }
 0x586   :  { %2912 = vmatpush3.bf16.msra.mxu1 %v3245_v10  ;;  %2866 = vmatpush3.bf16.msra.mxu0 %v3363_v48 }
 0x587   :  { %2913 = vmatprep.subr.bf16.mxu1 %v3010_v24  ;;  %2868 = vmatprep.subr.bf16.mxu0 %v3365_v49 }
 0x58a   :  { %2915 = vmatpush3.bf16.msra.mxu1 %v3263_v18  ;;  %2870 = vmatpush3.bf16.msra.mxu0 %v3375_v52 }
 0x58b   :  { %2916 = vmatprep.subr.bf16.mxu1 %v3010_v24  ;;  %2872 = vmatprep.subr.bf16.mxu0 %v3388_v57 }
 0x58e   :  { %2918 = vmatpush3.bf16.msra.mxu1 %v3279_v25  ;;  %2874 = vmatpush3.bf16.msra.mxu0 %v3393_v59 }
 0x58f   :  { %2876 = vmatprep.subr.bf16.mxu0 %v3403_v62  ;;  %2951 = vmatprep.subr.bf16.mxu1 %v3010_v24 }
 0x592   :  { %2878 = vmatpush3.bf16.msra.mxu0 %v3411_v2 }
 0x593   :  { %2880 = vmatprep.subr.bf16.mxu0 %v3421_v5 }
 0x596   :  { %2882 = vmatpush3.bf16.msra.mxu0 %v3429_v8 }
 0x597   :  { %2884 = vmatprep.subr.bf16.mxu0 %v3439_v12 }
 0x59a   :  { %2886 = vmatpush3.bf16.msra.mxu0 %v3447_v15 }
 0x59b   :  { %2888 = vmatprep.subr.bf16.mxu0 %v3457_v21 }
 0x59e   :  { %2890 = vmatpush3.bf16.msra.mxu0 %v3465_v26 }
 0x59f   :  { %2892 = vmatprep.subr.bf16.mxu0 %v3475_v29 }
 0x5a2   :  { %2894 = vmatpush3.bf16.msra.mxu0 %v3483_v33 }
 0x5a3   :  { %2920 = vmatprep.subr.bf16.mxu0 %v3352_v44  ;;  %v1529_v44 = vld [vmem:[%s3816_s6 + $0x8] sm:$0xff] }
 0x644   :  { %v1308_v31 = vpop.f32.mrb[20].mxu1 }
 0x645   :  { %v1312_v42 = vadd.f32 %v1308_v31, %v3515_v56  ;;  %v2396_v54 = vpop.f32.mrb[21].mxu1 }
 0x647   :  { %3000 = vtanh.f32 %v1312_v42 }
 0x651   :  { %v3001_v1 = vpop.eup %3000 }
 0x652   :  { %2430 = vmatmul.mubr.f32.vlgmr.msra.gmra.mrb[22].mxu1 %v3001_v1 }
 0x653   :  { %2464 = vmatprep.mubr.msk.f32.mxu1 %vm3011_vm1, %v3012_v16  ;;  %v1528_v16 = vld [vmem:[%s3816_s6] sm:$0xff] }
 0x658   :  { %v2012_v10 = vpop.f32.mrb[26].mxu0 }
 0x659   :  { %v2013_v18 = vpop.f32.mrb[27].mxu0 }
 0x65a   :  { %v2014_v25 = vadd.f32 %v2013_v18, %v2012_v10 }
 0x65c   :  { %v1238_v50 = vadd.f32 %v2014_v25, %v3546_v60 }
 0x65e   :  { %3002 = vtanh.f32 %v1238_v50 }
 0x668   :  { %v3003_v9 = vpop.eup %3002 }
 0x669   :  { %1378 = vmatprep.mubr.f32.mxu0 %v3003_v9 }
 0x66a   :  { %1379 = vmatmul.mubr.f32.vlgmr.msra.gmra.mrb[28].mxu0 %v3001_v1 }
 0x66b   :  { %2922 = vmatpush3.bf16.msra.mxu0 %v3363_v48  ;;  %v1530_v48 = vld [vmem:[%s3816_s6 + $0x10] sm:$0xff] }
 0x66c   :  { %2924 = vmatprep.subr.bf16.mxu0 %v3365_v49  ;;  %v2952_v49 = vpack.c.bf16 %v1529_v44, %v1528_v16 }
 0x66e   :  { %2953 = vmatpush3.bf16.msra.mxu1 %v2952_v49 }
 0x66f   :  { %2926 = vmatpush3.bf16.msra.mxu0 %v3375_v52  ;;  %v1531_v52 = vld [vmem:[%s3816_s6 + $0x18] sm:$0xff]  ;;  %2954 = vmatprep.subr.bf16.mxu1 %v3010_v24 }
 0x670   :  { %2928 = vmatprep.subr.bf16.mxu0 %v3388_v57  ;;  %v2955_v57 = vpack.c.bf16 %v1531_v52, %v1530_v48 }
 0x672   :  { %2956 = vmatpush3.bf16.msra.mxu1 %v2955_v57 }
 0x673   :  { %2930 = vmatpush3.bf16.msra.mxu0 %v3393_v59  ;;  %v1532_v59 = vld [vmem:[%s3816_s6 + $0x20] sm:$0xff]  ;;  %2957 = vmatprep.subr.bf16.mxu1 %v3010_v24 }
 0x674   :  { %2932 = vmatprep.subr.bf16.mxu0 %v3403_v62  ;;  %v1533_v62 = vld [vmem:[%s3816_s6 + $0x28] sm:$0xff] }
 0x677   :  { %2934 = vmatpush3.bf16.msra.mxu0 %v3411_v2  ;;  %v2958_v2 = vpack.c.bf16 %v1533_v62, %v1532_v59 }
 0x678   :  { %2936 = vmatprep.subr.bf16.mxu0 %v3421_v5  ;;  %v1534_v5 = vld [vmem:[%s3816_s6 + $0x30] sm:$0xff] }
 0x679   :  { %2959 = vmatpush3.bf16.msra.mxu1 %v2958_v2 }
 0x67a   :  { %2960 = vmatprep.subr.bf16.mxu1 %v3010_v24 }
 0x67b   :  { %2938 = vmatpush3.bf16.msra.mxu0 %v3429_v8  ;;  %v1535_v8 = vld [vmem:[%s3816_s6 + $0x38] sm:$0xff] }
 0x67c   :  { %2940 = vmatprep.subr.bf16.mxu0 %v3439_v12  ;;  %v2961_v12 = vpack.c.bf16 %v1535_v8, %v1534_v5 }
 0x67e   :  { %2962 = vmatpush3.bf16.msra.mxu1 %v2961_v12 }
 0x67f   :  { %2942 = vmatpush3.bf16.msra.mxu0 %v3447_v15  ;;  %2963 = vmatprep.subr.bf16.mxu1 %v3010_v24 }
 0x680   :  { %2944 = vmatprep.subr.bf16.mxu0 %v3457_v21 }
 0x683   :  { %2946 = vmatpush3.bf16.msra.mxu0 %v3465_v26 }
 0x684   :  { %2948 = vmatprep.subr.bf16.mxu0 %v3475_v29 }
 0x687   :  { %2950 = vmatpush3.bf16.msra.mxu0 %v3483_v33 }
 0x725   :  { %v1451_v15 = vpop.f32.mrb[22].mxu1 }
 0x726   :  { %v1455_v21 = vadd.f32 %v1451_v15, %v3522_v58  ;;  %v2431_v26 = vpop.f32.mrb[23].mxu1  ;;  %v1537_v58 = vld [vmem:[%s3816_s6 + $0x48] sm:$0xff] }
 0x727   :  { %v2964_v22 = vpack.c.bf16 %v1537_v58, %v1536_v19 }
 0x729   :  { %2965 = vmatpush3.bf16.msra.mxu1 %v2964_v22 }
 0x72a   :  { %2966 = vmatprep.subr.bf16.mxu1 %v3010_v24 }
 0x72d   :  { %2968 = vmatpush3.bf16.msra.mxu1 %v2967_v28 }
 0x72e   :  { %2969 = vmatprep.subr.bf16.mxu1 %v3010_v24 }
 0x731   :  { %2971 = vmatpush3.bf16.msra.mxu1 %v2970_v35 }
 0x732   :  { %2972 = vmatprep.subr.bf16.mxu1 %v3010_v24 }
 0x735   :  { %2974 = vmatpush3.bf16.msra.mxu1 %v2973_v36 }
 0x73d   :  { %v2064_v29 = vpop.f32.mrb[28].mxu0 }
 0x73e   :  { %v2065_v33 = vpop.f32.mrb[29].mxu0 }
 0x73f   :  { %v2066_v56 = vadd.f32 %v2065_v33, %v2064_v29 }
 0x741   :  { %v1381_v11 = vadd.f32 %v2066_v56, %v3546_v60 }
 0x743   :  { %3004 = vtanh.f32 %v1381_v11 }
 0x744   :  { %3006 = vtanh.f32 %v1455_v21 }
 0x74d   :  { %v3005_v13 = vpop.eup %3004 }
 0x74e   :  { %v3007_v17 = vpop.eup %3006  ;;  %1521 = vmatprep.mubr.f32.mxu0 %v3005_v13 }
 0x74f   :  { %1522 = vmatmul.mubr.f32.vlgmr.msra.gmra.mrb[30].mxu0 %v3007_v17 }
 0x822   :  { %v2116_v46 = vpop.f32.mrb[30].mxu0 }
 0x823   :  { %v2117_v27 = vpop.f32.mrb[31].mxu0 }
 0x824   :  { %v2118_v47 = vadd.f32 %v2117_v27, %v2116_v46 }
 0x826   :  { %v1524_v39 = vadd.f32 %v2118_v47, %v3546_v60 }
 0x828   :  { %3008 = vtanh.f32 %v1524_v39 }
 0x832   :  { %v3009_v51 = vpop.eup %3008 }
 0x833   :  { %2465 = vmatmul.mubr.f32.vlgmr.msra.gmra.mrb[24].mxu1 %v3009_v51 }
 0x906   :  { %v1617_v55 = vpop.f32.mrb[24].mxu1 }
 0x907   :  { %v1618_v38 = vadd.f32 %v1636_v53, %v1617_v55  ;;  %v2466_v40 = vpop.f32.mrb[25].mxu1 }
 0x909   :  { %1621 = vst [vmem:[%s3818_s8] sm:$0xff] %v1618_v38 }

</bundles_post_ra>
